<compile_context>
chip_gen: v7x
topology: tpu7x:2x2x1
jax: 0.10.0
libtpu: 0.0.40
codegen_flags: <defaults>
</compile_context>

<pallas_src>
import functools

import jax
import jax.numpy as jnp
import numpy as np
from jax.experimental import pallas as pl
from jax.experimental.pallas import tpu as pltpu

LN_EPS = 1e-5


def _context_kernel(x_ref, wm_ref, bm_ref, w1_ref, b1_ref, gamma_ref, beta_ref,
                    w2_ref, b2_ref, term_ref, m_ref, s_ref, acc_ref,
                    *, hw, tile, use_mxu_logits):
    """Pass 1: online-softmax spatial pooling + channel_add MLP.

    x_ref block: (1, C, TILE).  term_ref block: (1, C, 1).
    Scratch: m (1,1) running max, s (1,1) running denom, acc (C,1) running
    unnormalized context.  Grid = (B, cdiv(HW, TILE)), spatial axis last.
    """
    t = pl.program_id(1)
    nt = pl.num_programs(1)

    @pl.when(t == 0)
    def _init():
        m_ref[...] = jnp.full_like(m_ref, -jnp.inf)
        s_ref[...] = jnp.zeros_like(s_ref)
        acc_ref[...] = jnp.zeros_like(acc_ref)

    x = x_ref[0].astype(jnp.float32)                                     # (C, TILE)

    ragged = (hw % tile) != 0
    if ragged:
        # The tail block is ragged: Pallas edge-block reads are undefined, so
        # zero-mask x (keeps acc exact and NaN-free) ...
        lane = jax.lax.broadcasted_iota(jnp.int32, (1, tile), 1)
        valid = (t * tile + lane) < hw
        x = jnp.where(valid, x, 0.0)

    if use_mxu_logits:
        # Offload the logit reduction to the (otherwise idle) MXU; useful on
        # v7x where the f32 stream can saturate the 4 VALU slots.
        logits = jax.lax.dot_general(
            wm_ref[...], x, (((0,), (0,)), ((), ())),
            preferred_element_type=jnp.float32) + bm_ref[0, 0]           # (1, TILE)
    else:
        # conv_mask 1x1 logits: VPU broadcast-multiply + sublane reduce
        # (avoids a degenerate M=1 MXU matmul).
        logits = jnp.sum(x * wm_ref[...], axis=0, keepdims=True) + bm_ref[0, 0]

    if ragged:
        # ... and -inf-mask the logits so padded lanes get zero softmax weight.
        logits = jnp.where(valid, logits, -jnp.inf)

    # Online softmax update (flash-attention style).
    m_new = jnp.maximum(m_ref[...], jnp.max(logits, axis=-1, keepdims=True))  # (1,1)
    scale = jnp.exp(m_ref[...] - m_new)                                       # (1,1)
    p = jnp.exp(logits - m_new)                                               # (1, TILE)
    s_ref[...] = s_ref[...] * scale + jnp.sum(p, axis=-1, keepdims=True)
    acc_ref[...] = acc_ref[...] * scale + jnp.sum(x * p, axis=-1, keepdims=True)
    m_ref[...] = m_new

    @pl.when(t == nt - 1)
    def _finalize():
        # Exact reciprocal (approx could breach the 1e-5 softmax tolerance).
        context = acc_ref[...] * pl.reciprocal(s_ref[...])                    # (C, 1)
        # channel_add_conv: Conv1x1 -> LayerNorm([P,1,1]) -> ReLU -> Conv1x1.
        h = jnp.dot(w1_ref[...], context,
                    preferred_element_type=jnp.float32) + b1_ref[...]         # (P, 1)
        mean = jnp.mean(h)
        var = jnp.mean((h - mean) ** 2)                                       # biased, as PyTorch
        hn = (h - mean) * jax.lax.rsqrt(var + LN_EPS)
        hn = hn * gamma_ref[...] + beta_ref[...]
        hr = jnp.maximum(hn, 0.0)
        term = jnp.dot(w2_ref[...], hr,
                       preferred_element_type=jnp.float32) + b2_ref[...]      # (C, 1)
        term_ref[0] = term.astype(term_ref.dtype)


def _fuse_kernel(x_ref, term_ref, out_ref):
    """Pass 2: out = x + term, term broadcast over the spatial (lane) axis.

    The per-channel term is cast once to the x dtype so bf16 inputs add
    natively on v6e/v7x (f32 inputs are bit-identical to the old path).
    Edge-block writes are masked by Pallas, so no ragged handling is needed.
    """
    term = term_ref[0].astype(out_ref.dtype)                              # (C, 1)
    out_ref[0] = x_ref[0] + term


def _round_up(v, m):
    return -(-v // m) * m


def _vmem_capacity():
    """Per-core VMEM bytes (v5e/v6e: 128 MiB, v7x: 64 MiB), with a safe fallback."""
    try:
        cap = int(pltpu.get_tpu_info().vmem_capacity_bytes)
        if cap > 0:
            return cap
    except Exception:
        pass
    return 64 << 20  # conservative (v7x per-TC VMEM)


def _choose_tiles(hw, c, itemsize, weight_bytes):
    """Pick lane tiles (pass1, pass2) from a chip-scaled VMEM budget.

    Pass 1 double-buffers only the (C, tile) x stream (+ weights); pass 2
    double-buffers both x and out, so pass 1's tile is ~2x for the same budget.
    Uses the true itemsize so bf16 tiles are 2x wider than f32.
    """
    cap = _vmem_capacity()
    budget = max(16 << 20, min(int(cap * 0.4), 56 << 20))   # ~25 MiB v7x, ~51 MiB v5e/v6e
    hw_cap = _round_up(hw, 128)
    itemsize = int(itemsize)

    def pick(n_buffers, extra):
        t = ((budget - extra) // (n_buffers * c * itemsize)) // 128 * 128
        return int(max(128, min(t, 8192, hw_cap)))

    tile1 = pick(2, 2 * weight_bytes)   # pass 1: x in (2 bufs) + weights
    tile2 = pick(4, 0)                  # pass 2: x in (2) + out (2)
    return tile1, tile2


def _vmem_limit(tile_bytes):
    """tile working set + headroom, never approaching the physical VMEM (v7x!)."""
    cap = _vmem_capacity()
    hard_cap = min(int(cap * 0.75), 96 << 20)   # ~48 MiB on v7x, 96 MiB on v5e/v6e
    return int(min(max(tile_bytes + (8 << 20), 16 << 20), hard_cap))


def context_block_forward(x, params, tiles=None, use_mxu_logits=False):
    """x: (B, C, H, W).  Returns (B, C, H, W) ContextBlock forward."""
    B, C, H, W = x.shape
    HW = H * W
    itemsize = jnp.dtype(x.dtype).itemsize

    weights = (params["w_mask"], params["b_mask"], params["w1"], params["b1"],
               params["gamma"], params["beta"], params["w2"], params["b2"])
    weight_bytes = sum(int(w.size) * jnp.dtype(w.dtype).itemsize for w in weights)

    if tiles is None:
        tile1, tile2 = _choose_tiles(HW, C, itemsize, weight_bytes)
    else:
        tile1, tile2 = tiles
    nt1 = pl.cdiv(HW, tile1)
    nt2 = pl.cdiv(HW, tile2)

    # No host-side padding: (B, C, HW) is a free bitcast view of x, and the
    # ragged tail tile is handled inside the kernels.
    x_flat = x.reshape(B, C, HW)

    def full(arr):
        nd = arr.ndim
        return pl.BlockSpec(arr.shape, lambda b, t: (0,) * nd)

    # ---- pass 1: attention pooling + channel_add MLP -> term (B, C, 1) ----
    vmem1 = _vmem_limit(2 * C * tile1 * itemsize + 2 * weight_bytes + 8 * C * 4)
    term = pl.pallas_call(
        functools.partial(_context_kernel, hw=HW, tile=tile1,
                          use_mxu_logits=use_mxu_logits),
        out_shape=jax.ShapeDtypeStruct((B, C, 1), jnp.float32),
        grid_spec=pltpu.PrefetchScalarGridSpec(
            num_scalar_prefetch=0,
            grid=(B, nt1),
            in_specs=[
                pl.BlockSpec((1, C, tile1), lambda b, t: (b, 0, t)),  # x tile
                full(params["w_mask"]),                               # (C, 1)
                full(params["b_mask"]),                               # (1, 1)
                full(params["w1"]),                                   # (P, C)
                full(params["b1"]),                                   # (P, 1)
                full(params["gamma"]),                                # (P, 1)
                full(params["beta"]),                                 # (P, 1)
                full(params["w2"]),                                   # (C, P)
                full(params["b2"]),                                   # (C, 1)
            ],
            out_specs=pl.BlockSpec((1, C, 1), lambda b, t: (b, 0, 0)),
            scratch_shapes=[
                pltpu.VMEM((1, 1), jnp.float32),   # running max
                pltpu.VMEM((1, 1), jnp.float32),   # running softmax denom
                pltpu.VMEM((C, 1), jnp.float32),   # running (unnormalized) context
            ],
        ),
        compiler_params=pltpu.CompilerParams(
            dimension_semantics=("parallel", "arbitrary"),
            vmem_limit_bytes=vmem1),
        cost_estimate=pl.CostEstimate(
            flops=int(5 * B * C * HW),
            transcendentals=int(B * HW),
            bytes_accessed=int(B * C * HW * itemsize + weight_bytes + B * C * 4)),
    )(x_flat, *weights)

    # ---- pass 2: lane-dense broadcast fuse out = x + term (exact shape, no pad) ----
    # (input_output_aliases={0: 0} could drop the extra HBM allocation, but
    #  outside a donating jit it forces a defensive copy of x, so we skip it.)
    vmem2 = _vmem_limit(4 * C * tile2 * itemsize + 2 * C * 4)
    out_flat = pl.pallas_call(
        _fuse_kernel,
        out_shape=jax.ShapeDtypeStruct((B, C, HW), x.dtype),
        grid_spec=pltpu.PrefetchScalarGridSpec(
            num_scalar_prefetch=0,
            grid=(B, nt2),
            in_specs=[
                pl.BlockSpec((1, C, tile2), lambda b, t: (b, 0, t)),
                pl.BlockSpec((1, C, 1), lambda b, t: (b, 0, 0)),
            ],
            out_specs=pl.BlockSpec((1, C, tile2), lambda b, t: (b, 0, t)),
        ),
        compiler_params=pltpu.CompilerParams(
            dimension_semantics=("parallel", "parallel"),
            vmem_limit_bytes=vmem2),
        cost_estimate=pl.CostEstimate(
            flops=int(B * C * HW),
            transcendentals=0,
            bytes_accessed=int(2 * B * C * HW * itemsize + B * C * 4)),
    )(x_flat, term)

    return out_flat.reshape(B, C, H, W)   # free bitcast (contiguous, unpadded)


def init_params(key, inplanes, ratio):
    planes = int(inplanes * ratio)
    ks = jax.random.split(key, 6)
    scale = 0.1
    return {
        "w_mask": scale * jax.random.normal(ks[0], (inplanes, 1), jnp.float32),
        "b_mask": scale * jax.random.normal(ks[1], (1, 1), jnp.float32),
        "w1":     scale * jax.random.normal(ks[2], (planes, inplanes), jnp.float32),
        "b1":     scale * jax.random.normal(ks[3], (planes, 1), jnp.float32),
        "gamma":  jnp.ones((planes, 1), jnp.float32),   # LayerNorm weight init = 1
        "beta":   jnp.zeros((planes, 1), jnp.float32),  # LayerNorm bias   init = 0
        "w2":     scale * jax.random.normal(ks[4], (inplanes, planes), jnp.float32),
        "b2":     scale * jax.random.normal(ks[5], (inplanes, 1), jnp.float32),
    }


def reference_forward(x, params):
    """Pure-JAX reference of the same math (for a sanity check)."""
    B, C, H, W = x.shape
    hp = jax.lax.Precision.HIGHEST
    xf = x.reshape(B, C, H * W).astype(jnp.float32)
    logits = (jnp.einsum("co,bcn->bon", params["w_mask"], xf, precision=hp)
              + params["b_mask"][0, 0])
    attn = jax.nn.softmax(logits, axis=-1)                                   # (B, 1, HW)
    context = jnp.einsum("bcn,bon->bc", xf, attn, precision=hp)[..., None]   # (B, C, 1)
    h = jnp.einsum("pc,bcx->bpx", params["w1"], context, precision=hp) + params["b1"]
    mean = jnp.mean(h, axis=(1, 2), keepdims=True)
    var = jnp.mean((h - mean) ** 2, axis=(1, 2), keepdims=True)
    hn = (h - mean) / jnp.sqrt(var + LN_EPS) * params["gamma"] + params["beta"]
    hr = jnp.maximum(hn, 0.0)
    term = jnp.einsum("cp,bpx->bcx", params["w2"], hr, precision=hp) + params["b2"]
    return x + term[:, :, :, None].astype(x.dtype)


if __name__ == "__main__":
    key = jax.random.PRNGKey(0)
    kx, kp = jax.random.split(key)

    B, C, H, W = 2, 8, 20, 20        # inplanes=8, HW=400 (not lane-aligned)
    ratio = 0.25                      # planes = 2

    x = jax.random.normal(kx, (B, C, H, W), jnp.float32)
    params = init_params(kp, C, ratio)

    # tiles=(256, 128) forces multiple spatial tiles AND ragged tail blocks in
    # both passes, so the online-softmax accumulation and edge-masking paths
    # are exercised; production use would leave tiles=None for the chip-aware
    # VMEM-budgeted automatic choice.
    out = context_block_forward(x, params, tiles=(256, 128))
    out = jax.block_until_ready(out)

    ref = jax.block_until_ready(reference_forward(x, params))
    np.testing.assert_allclose(np.asarray(out), np.asarray(ref), rtol=1e-5, atol=1e-5)

    print("KERNEL_OK")
</pallas_src>

<mosaic_0001>
module attributes {stable_mosaic.version = 11 : i64} {
  func.func @_context_kernel(%arg0: i32, %arg1: i32, %arg2: memref<1x8x256xf32, #tpu.memory_space<vmem>>, %arg3: memref<8x1xf32, #tpu.memory_space<vmem>>, %arg4: memref<1x1xf32, #tpu.memory_space<vmem>>, %arg5: memref<2x8xf32, #tpu.memory_space<vmem>>, %arg6: memref<2x1xf32, #tpu.memory_space<vmem>>, %arg7: memref<2x1xf32, #tpu.memory_space<vmem>>, %arg8: memref<2x1xf32, #tpu.memory_space<vmem>>, %arg9: memref<8x2xf32, #tpu.memory_space<vmem>>, %arg10: memref<8x1xf32, #tpu.memory_space<vmem>>, %arg11: memref<1x8x1xf32, #tpu.memory_space<vmem>>, %arg12: memref<1x1xf32, #tpu.memory_space<vmem>>, %arg13: memref<1x1xf32, #tpu.memory_space<vmem>>, %arg14: memref<8x1xf32, #tpu.memory_space<vmem>>) attributes {dimension_semantics = [#tpu.dimension_semantics<parallel>, #tpu.dimension_semantics<arbitrary>], iteration_bounds = array<i64: 2, 2>, scalar_prefetch = 0 : i64, scratch_operands = 3 : i64, tpu.core_type = #tpu.core_type<tc>, window_params = [{transform_indices = @transform_0, window_bounds = array<i64: 1, 8, 256>}, {pipeline_mode = #tpu.pipeline_mode<synchronous>, transform_indices = @transform_1, window_bounds = array<i64: 8, 1>}, {pipeline_mode = #tpu.pipeline_mode<synchronous>, transform_indices = @transform_2, window_bounds = array<i64: 1, 1>}, {pipeline_mode = #tpu.pipeline_mode<synchronous>, transform_indices = @transform_3, window_bounds = array<i64: 2, 8>}, {pipeline_mode = #tpu.pipeline_mode<synchronous>, transform_indices = @transform_4, window_bounds = array<i64: 2, 1>}, {pipeline_mode = #tpu.pipeline_mode<synchronous>, transform_indices = @transform_5, window_bounds = array<i64: 2, 1>}, {pipeline_mode = #tpu.pipeline_mode<synchronous>, transform_indices = @transform_6, window_bounds = array<i64: 2, 1>}, {pipeline_mode = #tpu.pipeline_mode<synchronous>, transform_indices = @transform_7, window_bounds = array<i64: 8, 2>}, {pipeline_mode = #tpu.pipeline_mode<synchronous>, transform_indices = @transform_8, window_bounds = array<i64: 8, 1>}, {transform_indices = @transform_9, window_bounds = array<i64: 1, 8, 1>}]} {
    %c0_i32 = arith.constant 0 : i32
    %0 = arith.cmpi eq, %arg1, %c0_i32 : i32
    %1 = arith.extui %0 : i1 to i32
    %c0_i32_0 = arith.constant 0 : i32
    %2 = arith.cmpi ne, %1, %c0_i32_0 : i32
    scf.if %2 {
      %cst_27 = arith.constant 0xFF800000 : f32
      %55 = vector.broadcast %cst_27 : f32 to vector<1x1xf32>
      %c0_28 = arith.constant 0 : index
      %c0_29 = arith.constant 0 : index
      %56 = vector.load %arg12[%c0_28, %c0_29] : memref<1x1xf32, #tpu.memory_space<vmem>>, vector<1x1xf32>
      tpu.vector_store %arg12[%c0_28, %c0_29], %55 {strides = array<i32>} : memref<1x1xf32, #tpu.memory_space<vmem>>, vector<1x1xf32>,
      %cst_30 = arith.constant 0.000000e+00 : f32
      %57 = vector.broadcast %cst_30 : f32 to vector<1x1xf32>
      %c0_31 = arith.constant 0 : index
      %c0_32 = arith.constant 0 : index
      %58 = vector.load %arg13[%c0_31, %c0_32] : memref<1x1xf32, #tpu.memory_space<vmem>>, vector<1x1xf32>
      tpu.vector_store %arg13[%c0_31, %c0_32], %57 {strides = array<i32>} : memref<1x1xf32, #tpu.memory_space<vmem>>, vector<1x1xf32>,
      %cst_33 = arith.constant 0.000000e+00 : f32
      %59 = vector.broadcast %cst_33 : f32 to vector<8x1xf32>
      %c0_34 = arith.constant 0 : index
      %c0_35 = arith.constant 0 : index
      %60 = vector.load %arg14[%c0_34, %c0_35] : memref<8x1xf32, #tpu.memory_space<vmem>>, vector<8x1xf32>
      tpu.vector_store %arg14[%c0_34, %c0_35], %59 {strides = array<i32>} : memref<8x1xf32, #tpu.memory_space<vmem>>, vector<8x1xf32>,
    } else {
    }
    %c0 = arith.constant 0 : index
    %c0_1 = arith.constant 0 : index
    %c0_2 = arith.constant 0 : index
    %3 = vector.load %arg2[%c0, %c0_1, %c0_2] : memref<1x8x256xf32, #tpu.memory_space<vmem>>, vector<1x8x256xf32>
    %4 = vector.shape_cast %3 : vector<1x8x256xf32> to vector<8x256xf32>
    %5 = tpu.iota {dimensions = array<i32: 1>} : vector<1x256xi32>
    %c256_i32 = arith.constant 256 : i32
    %6 = arith.muli %arg1, %c256_i32 : i32
    %7 = vector.broadcast %6 : i32 to vector<1x256xi32>
    %8 = arith.addi %7, %5 : vector<1x256xi32>
    %c400_i32 = arith.constant 400 : i32
    %9 = vector.broadcast %c400_i32 : i32 to vector<1x256xi32>
    %10 = arith.cmpi slt, %8, %9 : vector<1x256xi32>
    %cst = arith.constant 0.000000e+00 : f32
    %11 = vector.shape_cast %10 : vector<1x256xi1> to vector<1x256xi1>
    %12 = vector.broadcast %11 : vector<1x256xi1> to vector<8x256xi1>
    %13 = vector.broadcast %cst : f32 to vector<8x256xf32>
    %14 = arith.select %12, %4, %13 : vector<8x256xi1>, vector<8x256xf32>
    %c0_3 = arith.constant 0 : index
    %c0_4 = arith.constant 0 : index
    %15 = vector.load %arg3[%c0_3, %c0_4] : memref<8x1xf32, #tpu.memory_space<vmem>>, vector<8x1xf32>
    %16 = vector.broadcast %15 : vector<8x1xf32> to vector<8x256xf32>
    %17 = arith.mulf %14, %16 : vector<8x256xf32>
    %cst_5 = arith.constant dense<0.000000e+00> : vector<256xf32>
    %18 = vector.multi_reduction <add>, %17, %cst_5 [0] : vector<8x256xf32> to vector<256xf32>
    %19 = vector.shape_cast %18 : vector<256xf32> to vector<1x256xf32>
    %c0_6 = arith.constant 0 : index
    %c0_7 = arith.constant 0 : index
    %20 = vector.load %arg4[%c0_6, %c0_7] : memref<1x1xf32, #tpu.memory_space<vmem>>, vector<1x1xf32>
    %21 = vector.extract %20[0, 0] : f32 from vector<1x1xf32>
    %22 = vector.broadcast %21 : f32 to vector<1x256xf32>
    %23 = arith.addf %19, %22 : vector<1x256xf32>
    %cst_8 = arith.constant 0xFF800000 : f32
    %24 = vector.broadcast %cst_8 : f32 to vector<1x256xf32>
    %25 = arith.select %10, %23, %24 : vector<1x256xi1>, vector<1x256xf32>
    %c0_9 = arith.constant 0 : index
    %c0_10 = arith.constant 0 : index
    %26 = vector.load %arg12[%c0_9, %c0_10] : memref<1x1xf32, #tpu.memory_space<vmem>>, vector<1x1xf32>
    %cst_11 = arith.constant dense<0xFF800000> : vector<1xf32>
    %27 = vector.multi_reduction <maximumf>, %25, %cst_11 [1] : vector<1x256xf32> to vector<1xf32>
    %28 = vector.shape_cast %27 : vector<1xf32> to vector<1x1xf32>
    %29 = arith.maximumf %26, %28 : vector<1x1xf32>
    %c0_12 = arith.constant 0 : index
    %c0_13 = arith.constant 0 : index
    %30 = vector.load %arg12[%c0_12, %c0_13] : memref<1x1xf32, #tpu.memory_space<vmem>>, vector<1x1xf32>
    %31 = arith.subf %30, %29 : vector<1x1xf32>
    %32 = math.exp %31 : vector<1x1xf32>
    %33 = vector.broadcast %29 : vector<1x1xf32> to vector<1x256xf32>
    %34 = arith.subf %25, %33 : vector<1x256xf32>
    %35 = math.exp %34 : vector<1x256xf32>
    %c0_14 = arith.constant 0 : index
    %c0_15 = arith.constant 0 : index
    %36 = vector.load %arg13[%c0_14, %c0_15] : memref<1x1xf32, #tpu.memory_space<vmem>>, vector<1x1xf32>
    %37 = arith.mulf %36, %32 : vector<1x1xf32>
    %cst_16 = arith.constant dense<0.000000e+00> : vector<1xf32>
    %38 = vector.multi_reduction <add>, %35, %cst_16 [1] : vector<1x256xf32> to vector<1xf32>
    %39 = vector.shape_cast %38 : vector<1xf32> to vector<1x1xf32>
    %40 = arith.addf %37, %39 : vector<1x1xf32>
    %c0_17 = arith.constant 0 : index
    %c0_18 = arith.constant 0 : index
    %41 = vector.load %arg13[%c0_17, %c0_18] : memref<1x1xf32, #tpu.memory_space<vmem>>, vector<1x1xf32>
    tpu.vector_store %arg13[%c0_17, %c0_18], %40 {strides = array<i32>} : memref<1x1xf32, #tpu.memory_space<vmem>>, vector<1x1xf32>,
    %c0_19 = arith.constant 0 : index
    %c0_20 = arith.constant 0 : index
    %42 = vector.load %arg14[%c0_19, %c0_20] : memref<8x1xf32, #tpu.memory_space<vmem>>, vector<8x1xf32>
    %43 = vector.broadcast %32 : vector<1x1xf32> to vector<8x1xf32>
    %44 = arith.mulf %42, %43 : vector<8x1xf32>
    %45 = vector.broadcast %35 : vector<1x256xf32> to vector<8x256xf32>
    %46 = arith.mulf %14, %45 : vector<8x256xf32>
    %cst_21 = arith.constant dense<0.000000e+00> : vector<8xf32>
    %47 = vector.multi_reduction <add>, %46, %cst_21 [1] : vector<8x256xf32> to vector<8xf32>
    %48 = vector.shape_cast %47 : vector<8xf32> to vector<8x1xf32>
    %49 = arith.addf %44, %48 : vector<8x1xf32>
    %c0_22 = arith.constant 0 : index
    %c0_23 = arith.constant 0 : index
    %50 = vector.load %arg14[%c0_22, %c0_23] : memref<8x1xf32, #tpu.memory_space<vmem>>, vector<8x1xf32>
    tpu.vector_store %arg14[%c0_22, %c0_23], %49 {strides = array<i32>} : memref<8x1xf32, #tpu.memory_space<vmem>>, vector<8x1xf32>,
    %c0_24 = arith.constant 0 : index
    %c0_25 = arith.constant 0 : index
    %51 = vector.load %arg12[%c0_24, %c0_25] : memref<1x1xf32, #tpu.memory_space<vmem>>, vector<1x1xf32>
    tpu.vector_store %arg12[%c0_24, %c0_25], %29 {strides = array<i32>} : memref<1x1xf32, #tpu.memory_space<vmem>>, vector<1x1xf32>,
    %c1_i32 = arith.constant 1 : i32
    %52 = arith.cmpi eq, %arg1, %c1_i32 : i32
    %53 = arith.extui %52 : i1 to i32
    %c0_i32_26 = arith.constant 0 : i32
    %54 = arith.cmpi ne, %53, %c0_i32_26 : i32
    scf.if %54 {
      %c0_27 = arith.constant 0 : index
      %c0_28 = arith.constant 0 : index
      %55 = vector.load %arg14[%c0_27, %c0_28] : memref<8x1xf32, #tpu.memory_space<vmem>>, vector<8x1xf32>
      %c0_29 = arith.constant 0 : index
      %c0_30 = arith.constant 0 : index
      %56 = vector.load %arg13[%c0_29, %c0_30] : memref<1x1xf32, #tpu.memory_space<vmem>>, vector<1x1xf32>
      %57 = tpu.reciprocal %56 : vector<1x1xf32> -> vector<1x1xf32>
      %58 = vector.broadcast %57 : vector<1x1xf32> to vector<8x1xf32>
      %59 = arith.mulf %55, %58 : vector<8x1xf32>
      %c0_31 = arith.constant 0 : index
      %c0_32 = arith.constant 0 : index
      %60 = vector.load %arg5[%c0_31, %c0_32] : memref<2x8xf32, #tpu.memory_space<vmem>>, vector<2x8xf32>
      %cst_33 = arith.constant dense<0.000000e+00> : vector<2x1xf32>
      %61 = tpu.matmul %60, %59, %cst_33 {dimension_numbers = #tpu.dot_dimension_numbers<[1], [0], [0], [1], [0, 0, 1, 1], [], []>} : vector<2x8xf32>, vector<8x1xf32>, vector<2x1xf32> -> vector<2x1xf32>
      %c0_34 = arith.constant 0 : index
      %c0_35 = arith.constant 0 : index
      %62 = vector.load %arg6[%c0_34, %c0_35] : memref<2x1xf32, #tpu.memory_space<vmem>>, vector<2x1xf32>
      %63 = arith.addf %61, %62 : vector<2x1xf32>
      %64 = vector.shape_cast %63 : vector<2x1xf32> to vector<1x2x1xf32>
      %cst_36 = arith.constant dense<0.000000e+00> : vector<1xf32>
      %65 = vector.multi_reduction <add>, %64, %cst_36 [1, 2] : vector<1x2x1xf32> to vector<1xf32>
      %66 = vector.shape_cast %65 : vector<1xf32> to vector<1x1x1xf32>
      %67 = vector.extract %66[0, 0, 0] : f32 from vector<1x1x1xf32>
      %cst_37 = arith.constant 2.000000e+00 : f32
      %68 = arith.divf %67, %cst_37 : f32
      %69 = vector.broadcast %68 : f32 to vector<2x1xf32>
      %70 = arith.subf %63, %69 : vector<2x1xf32>
      %71 = arith.mulf %70, %70 : vector<2x1xf32>
      %72 = vector.shape_cast %71 : vector<2x1xf32> to vector<1x2x1xf32>
      %cst_38 = arith.constant dense<0.000000e+00> : vector<1xf32>
      %73 = vector.multi_reduction <add>, %72, %cst_38 [1, 2] : vector<1x2x1xf32> to vector<1xf32>
      %74 = vector.shape_cast %73 : vector<1xf32> to vector<1x1x1xf32>
      %75 = vector.extract %74[0, 0, 0] : f32 from vector<1x1x1xf32>
      %cst_39 = arith.constant 2.000000e+00 : f32
      %76 = arith.divf %75, %cst_39 : f32
      %77 = vector.broadcast %68 : f32 to vector<2x1xf32>
      %78 = arith.subf %63, %77 : vector<2x1xf32>
      %cst_40 = arith.constant 9.99999974E-6 : f32
      %79 = arith.addf %76, %cst_40 : f32
      %80 = math.rsqrt %79 : f32
      %81 = vector.broadcast %80 : f32 to vector<2x1xf32>
      %82 = arith.mulf %78, %81 : vector<2x1xf32>
      %c0_41 = arith.constant 0 : index
      %c0_42 = arith.constant 0 : index
      %83 = vector.load %arg7[%c0_41, %c0_42] : memref<2x1xf32, #tpu.memory_space<vmem>>, vector<2x1xf32>
      %84 = arith.mulf %82, %83 : vector<2x1xf32>
      %c0_43 = arith.constant 0 : index
      %c0_44 = arith.constant 0 : index
      %85 = vector.load %arg8[%c0_43, %c0_44] : memref<2x1xf32, #tpu.memory_space<vmem>>, vector<2x1xf32>
      %86 = arith.addf %84, %85 : vector<2x1xf32>
      %cst_45 = arith.constant 0.000000e+00 : f32
      %87 = vector.broadcast %cst_45 : f32 to vector<2x1xf32>
      %88 = arith.maximumf %86, %87 : vector<2x1xf32>
      %c0_46 = arith.constant 0 : index
      %c0_47 = arith.constant 0 : index
      %89 = vector.load %arg9[%c0_46, %c0_47] : memref<8x2xf32, #tpu.memory_space<vmem>>, vector<8x2xf32>
      %cst_48 = arith.constant dense<0.000000e+00> : vector<8x1xf32>
      %90 = tpu.matmul %89, %88, %cst_48 {dimension_numbers = #tpu.dot_dimension_numbers<[1], [0], [0], [1], [0, 0, 1, 1], [], []>} : vector<8x2xf32>, vector<2x1xf32>, vector<8x1xf32> -> vector<8x1xf32>
      %c0_49 = arith.constant 0 : index
      %c0_50 = arith.constant 0 : index
      %91 = vector.load %arg10[%c0_49, %c0_50] : memref<8x1xf32, #tpu.memory_space<vmem>>, vector<8x1xf32>
      %92 = arith.addf %90, %91 : vector<8x1xf32>
      %c0_51 = arith.constant 0 : index
      %c0_52 = arith.constant 0 : index
      %c0_53 = arith.constant 0 : index
      %93 = vector.load %arg11[%c0_51, %c0_52, %c0_53] : memref<1x8x1xf32, #tpu.memory_space<vmem>>, vector<1x8x1xf32>
      %94 = vector.shape_cast %93 : vector<1x8x1xf32> to vector<8x1xf32>
      %95 = vector.shape_cast %92 : vector<8x1xf32> to vector<1x8x1xf32>
      tpu.vector_store %arg11[%c0_51, %c0_52, %c0_53], %95 {strides = array<i32>} : memref<1x8x1xf32, #tpu.memory_space<vmem>>, vector<1x8x1xf32>,
    } else {
    }
    return
  }
  func.func @transform_0(%arg0: i32, %arg1: i32) -> (i32, i32, i32) {
    %c0_i32 = arith.constant 0 : i32
    %c0_i32_0 = arith.constant 0 : i32
    return %arg0, %c0_i32, %arg1 : i32, i32, i32
  }
  func.func @transform_1(%arg0: i32, %arg1: i32) -> (i32, i32) {
    %c0_i32 = arith.constant 0 : i32
    %c0_i32_0 = arith.constant 0 : i32
    %c0_i32_1 = arith.constant 0 : i32
    return %c0_i32, %c0_i32_0 : i32, i32
  }
  func.func @transform_2(%arg0: i32, %arg1: i32) -> (i32, i32) {
    %c0_i32 = arith.constant 0 : i32
    %c0_i32_0 = arith.constant 0 : i32
    %c0_i32_1 = arith.constant 0 : i32
    return %c0_i32, %c0_i32_0 : i32, i32
  }
  func.func @transform_3(%arg0: i32, %arg1: i32) -> (i32, i32) {
    %c0_i32 = arith.constant 0 : i32
    %c0_i32_0 = arith.constant 0 : i32
    %c0_i32_1 = arith.constant 0 : i32
    return %c0_i32, %c0_i32_0 : i32, i32
  }
  func.func @transform_4(%arg0: i32, %arg1: i32) -> (i32, i32) {
    %c0_i32 = arith.constant 0 : i32
    %c0_i32_0 = arith.constant 0 : i32
    %c0_i32_1 = arith.constant 0 : i32
    return %c0_i32, %c0_i32_0 : i32, i32
  }
  func.func @transform_5(%arg0: i32, %arg1: i32) -> (i32, i32) {
    %c0_i32 = arith.constant 0 : i32
    %c0_i32_0 = arith.constant 0 : i32
    %c0_i32_1 = arith.constant 0 : i32
    return %c0_i32, %c0_i32_0 : i32, i32
  }
  func.func @transform_6(%arg0: i32, %arg1: i32) -> (i32, i32) {
    %c0_i32 = arith.constant 0 : i32
    %c0_i32_0 = arith.constant 0 : i32
    %c0_i32_1 = arith.constant 0 : i32
    return %c0_i32, %c0_i32_0 : i32, i32
  }
  func.func @transform_7(%arg0: i32, %arg1: i32) -> (i32, i32) {
    %c0_i32 = arith.constant 0 : i32
    %c0_i32_0 = arith.constant 0 : i32
    %c0_i32_1 = arith.constant 0 : i32
    return %c0_i32, %c0_i32_0 : i32, i32
  }
  func.func @transform_8(%arg0: i32, %arg1: i32) -> (i32, i32) {
    %c0_i32 = arith.constant 0 : i32
    %c0_i32_0 = arith.constant 0 : i32
    %c0_i32_1 = arith.constant 0 : i32
    return %c0_i32, %c0_i32_0 : i32, i32
  }
  func.func @transform_9(%arg0: i32, %arg1: i32) -> (i32, i32, i32) {
    %c0_i32 = arith.constant 0 : i32
    %c0_i32_0 = arith.constant 0 : i32
    %c0_i32_1 = arith.constant 0 : i32
    return %arg0, %c0_i32, %c0_i32_0 : i32, i32, i32
  }
}

</mosaic_0001>

<bundles_post_ra>
// kernel: tpu_custom_call.1
= control target key start
LH: loop header
LB: loop body
LE: loop exit
PB: predicated region body
PF: predicated region fallthrough
CT: control target
= control target key end

     0   :  { %s1240_s0 = inlined_call_operand.hbm [shape: f32[2,8,400], index: 0, kind: input, shape index: {}]   ;;  %s1241_s1 = inlined_call_operand.vmem [shape: f32[8,1], index: 1, kind: input, shape index: {}]   ;;  %s1242_s2 = inlined_call_operand.<no memory space> [shape: f32[1,1], index: 2, kind: input, shape index: {}]   ;;  %s1243_s3 = inlined_call_operand.vmem [shape: f32[2,8], index: 3, kind: input, shape index: {}]   ;;  %s1244_s4 = inlined_call_operand.vmem [shape: f32[2,1], index: 4, kind: input, shape index: {}]   ;;  %s1245_s5 = inlined_call_operand.vmem [shape: f32[2,1], index: 5, kind: input, shape index: {}]   ;;  %s1246_s6 = inlined_call_operand.vmem [shape: f32[2,1], index: 6, kind: input, shape index: {}]   ;;  %s1247_s7 = inlined_call_operand.vmem [shape: f32[8,2], index: 7, kind: input, shape index: {}]   ;;  %s1248_s8 = inlined_call_operand.vmem [shape: f32[8,1], index: 8, kind: input, shape index: {}]   ;;  %s1249_s9 = inlined_call_operand.vmem [shape: f32[2,8,1], index: 9, kind: output, shape index: {}]  }
   0x1   :  { %1252 = sst [smem:[#allocation11_spill]] %s1246_s6  ;;  %v14_v0 = vstv %s1242_s2 }
   0x2   :  { %1253 = sst [smem:[#allocation12_spill]] %s1247_s7  ;;  %15 = vst [vmem:[#allocation5] sm:$0x1] %v14_v0 }
   0x3   :  { %1254 = sst [smem:[#allocation13_spill]] %s1248_s8 }
   0x4   :  { %16 = vsyncpa [#allocation7], 0 }
   0x5   :  { %18 = vsyncpa [#allocation7 + $0x1], 0  ;;  %s1046_s11 = smov 0   ;;  %s1048_s12 = smov 0  }
   0x6   :  { %s1050_s13 = smov 0   ;;  %s1052_s14 = smov 0  }
   0x7   :  { %s1054_s15 = smov 0   ;;  %s1056_s16 = smov 0  }
   0x8   :  { %s1058_s17 = smov 0   ;;  %s1060_s18 = smov 0  }
   0x9 LB: > { %s760_s2 = sadd.s32 4294967295, %s985_s18   ;;  %s33_s19 = sadd.s32 1, %s977_s16  ;;  %s985_s18 = sphi %s1060_s18, %s24_s18   ;;  %s981_s17 = sphi %s1058_s17, %s1273_s17   ;;  %s977_s16 = sphi %s1056_s16, %s1272_s16   ;;  %s973_s15 = sphi %s1054_s15, %s1271_s15   ;;  %s969_s14 = sphi %s1052_s14, %s1270_s14   ;;  %s965_s13 = sphi %s1050_s13, %s1269_s13   ;;  %s961_s12 = sphi %s1048_s12, %s1268_s12   ;;  %s957_s11 = sphi %s1046_s11, %s1267_s11  }
   0xa   : > { %p34_p0 = scmp.ge.s32.totalorder %s33_s19, 2  ;;  %s36_s20 = sadd.s32 1, %s981_s17 }
   0xb   : > { %s45_s21 = sadd.s32 1, %s965_s13  ;;  %p52_p1 = scmp.ne.s32.totalorder %s965_s13, %s961_s12 }
   0xc   : > { %s1275_s19 = smov (%p34_p0, %s33_s19), 0  ;;  %s1277_s20 = smov (!%p34_p0, %s36_s20), %s981_s17 }
   0xd   : > { %1255 = sst [smem:[#allocation9_spill]] %s1275_s19  ;;  %s41_s22 = ssub.s32 %s977_s16, %s1275_s19 }
   0xe   : > { %p53_p2 = scmp.eq.s32.totalorder %s985_s18, 0  ;;  %p38_p3 = scmp.ge.s32.totalorder %s1277_s20, 2 }
   0xf   : > { %p58_p4 = scmp.ne.s32.totalorder %s961_s12, %s957_s11  ;;  %p59_p6 = scmp.eq.s32.totalorder %s760_s2, 0 }
  0x10   : > { %p1097_p5 = por %p53_p2, %p52_p1  ;;  %s1279_s20 = smov (%p38_p3, %s1277_s20), 0 }
  0x11   : > { %1257 = sst [smem:[#allocation10_spill]] %s1279_s20  ;;  %p1103_p7 = por %p59_p6, %p58_p4 }
  0x12   : > { %s40_s25 = ssub.s32 %s981_s17, %s1279_s20  ;;  %p807_p8 = scmp.lt.s32.totalorder %s985_s18, 4 }
  0x13   : > { %s42_s26 = sor.u32 %s41_s22, %s40_s25  ;;  %s300_s27 = sand.u32 1, %s965_s13  }
  0x14   : > { %p43_p9 = scmp.eq.s32.totalorder %s42_s26, 0  ;;  %s764_s28 = sshll.u32 %s300_s27, 4 }
  0x15   : > { %s765_s29 = sshll.u32 %s977_s16, 1  ;;  %s766_s10 = sshll.u32 %s981_s17, 2 }
  0x16   : > { %s1113_s30 = scalar_select %p43_p9, %s965_s13, %s45_s21  }
  0x17   : > { %s310_s11 = sadd.s32 %s766_s10, %s765_s29  ;;  %s304_s2 = scalar_lea.vmem [#allocation6], %s764_s28 }
  0x18   : > { %s314_s19 = sshll.u32 %s304_s2, 4  ;;  %s767_s8 = sshll.u32 %s310_s11, 7  ;;  %s1116_s19 = int_to_ptr.vmem [resolvable:$true] %s314_s19 }
  0x19   : > { %s1121_s20 = scalar_lea.hbm %s1240_s0, %s767_s8  ;;  %p1127_p10 = pnand %p807_p8, %p1097_p5 }
  0x1a   : > { %s301_s22 = scalar_lea.sflag [#allocation7], %s300_s27  ;;  %s889_s25 = scalar_lea.hbm %s1121_s20, 256 }
  0x1b   : > { %p890_p13 = scmp.ne.s32.totalorder %s1121_s20, %s889_s25  ;;  %p891_p0 = pneg %p1127_p10 }
  0x1c   : > { %s894_s8 = scalar_lea.hbm %s1240_s0, 1024  ;;  %p895_p3 = scmp.lt.u32.totalorder %s1121_s20, %s1240_s0 }
  0x1d   : > { %p892_p1 = pnand %p891_p0, %p890_p13  ;;  %p896_p4 = scmp.lt.u32.totalorder %s894_s8, %s889_s25 }
  0x1e   : > { %p898_p6 = scmp.lt.u32.totalorder %s889_s25, %s1121_s20 }
  0x1f   : > { %p893_p2 = pneg %p892_p1  ;;  %p897_p5 = por %p896_p4, %p895_p3 }
  0x21   : > { %p899_p8 = por %p898_p6, %p897_p5 }
  0x23   : > { %p900_p9 = pnand %p899_p8, %p893_p2 }
  0x25   : > { %903 = shalt.err (!%p900_p9)
}
  0x26   : > { %s904_s27 = scalar_lea.vmem %s1116_s19, 256  ;;  %s987_s28 = smov [#allocation6]  }
  0x27   : > { %p905_p13 = scmp.ne.s32.totalorder %s1116_s19, %s904_s27  ;;  %s909_s29 = sshll.u32 %s987_s28, 4  ;;  %s910_s29 = int_to_ptr.vmem [resolvable:$false] %s909_s29 }
  0x28   : > { %s911_s10 = scalar_lea.vmem %s910_s29, 512  ;;  %p912_p12 = scmp.lt.s32.totalorder %s1116_s19, %s910_s29 }
  0x29   : > { %p907_p1 = pnand %p905_p13, %p891_p0  ;;  %p913_p3 = scmp.lt.s32.totalorder %s911_s10, %s904_s27 }
  0x2b   : > { %p908_p11 = pneg %p907_p1  ;;  %p914_p4 = por %p913_p3, %p912_p12 }
  0x2d   : > { %p915_p5 = pnand %p914_p4, %p908_p11 }
  0x2f   : > { %918 = shalt.err (!%p915_p5)
}
  0x30   : > { %806 = dma.hbm_to_vmem [thread:$0]  (!%p1127_p10), %s1121_s20, 256, %s1116_s19, %s301_s22  }
  0x31   : > { %p1260_p2 = scmp.lt.s32.totalorder %s985_s18, 5  ;;  %p1261_p6 = scmp.ge.s32.totalorder %s985_s18, 1 }
  0x33   : > { %p320_p0 = pnand %p1261_p6, %p1260_p2 }
  0x34   : > { %s325_s11 = sand.u32 (!%p320_p0), 1, %s961_s12  }
  0x35   : > { %323 = sbr.rel (%p320_p0) target bundleno = 1601 (0x641), region = 56  ;;  %s1163_s2 = sshll.u32 (!%p320_p0), %s325_s11, 4 }
  0x36   : > { %s326_s25 = scalar_lea.sflag (!%p320_p0), [#allocation7], %s325_s11  ;;  %s329_s6 = scalar_lea.vmem (!%p320_p0), [#allocation6], %s1163_s2 }
  0x3c   : > { %952 = dma.done.wait (%p1103_p7), %s326_s25, 256  }
  0x3d   : > { %954 = vsyncadd (%p1103_p7), %s326_s25, 4294967040  ;;  %p364_p10 = scmp.lt.s32.totalorder %s973_s15, 1  ;;  %p771_p11 = scmp.ne.s32.totalorder %s969_s14, 0 }
  0x3e   : > { %vm372_vm0 = vcmask (!%p771_p11), 0   ;;  %vm375_vm1 = vcmask (!%p771_p11), 7168   ;;  %v988_v1 = vmov (!%p771_p11), -inf   ;;  %v989_v2 = vmov (!%p771_p11), 0.0  }
  0x3f   : > { %s1281_s15 = smov (!%p364_p10, %s973_s15), 1  ;;  %371 = sbr.rel (%p771_p11) target bundleno = 70 (0x46), region = 64 }
  0x40   : > { %s770_s19 = sshll.u32 %s1281_s15, 3  ;;  %373 = vst.msk [vmem:[#allocation2] sm:$0x1] (!%p771_p11), %vm372_vm0, %v988_v1  ;;  %374 = vst.msk [vmem:[#allocation3] sm:$0x1] (!%p771_p11), %vm372_vm0, %v989_v2 }
  0x41   : > { %s1175_s22 = scalar_lea.vmem %s1249_s9, %s770_s19  ;;  %376 = vst.msk [vmem:[#allocation4] sm:$0xff] (!%p771_p11), %vm375_vm1, %v989_v2 }
  0x46 PF: > { %v394_v3 = vld [vmem:[%s1241_s1] sm:$0xff]  ;;  %v414_v4 = vld [vmem:[#allocation5] sm:$0x1]  ;;  %v990_v5 = vmov 0   ;;  %v379_v6 = vlaneseq  ;;  %s772_s15 = sshll.u32 %s969_s14, 8  ;;  %vm450_vm4 = vcmask 0  }
  0x47   : > { %877 = vset.pattern.permute.xlu0 %v990_v5  ;;  %793 = vpush %v414_v4  ;;  %878 = vset.pattern.permute.xlu1 %v990_v5  ;;  %v383_v9 = vstv %s772_s15  ;;  %v377_v12 = vld [vmem:[%s329_s6] sm:$0xff]  ;;  %v378_v13 = vld [vmem:[%s329_s6 + $0x8] sm:$0xff]  ;;  %vm466_vm5 = vcmask 7168   ;;  %p773_p7 = scmp.ne.s32.totalorder %s969_s14, 1 }
  0x48   : > { %397 = vperm.xlu0 %877, %v394_v3   ;;  %v380_v7 = vand.u32 127, %v379_v6  ;;  %v421_v37 = vld [vmem:[#allocation2] sm:$0x1]  ;;  %v435_v41 = vshrl.u32 %v379_v6, 7  ;;  %v444_v57 = vld [vmem:[#allocation3] sm:$0x1] }
  0x49   : > { %v452_v59 = vld [vmem:[#allocation4] sm:$0xff]  ;;  %v991_v3 = vmov (!%p773_p7), 0.0   ;;  %vm992_vm6 = vmmov (!%p773_p7), 0   ;;  %vm485_vm7 = vcmask (!%p773_p7), 64512   ;;  %vm559_vm8 = vcmask (!%p773_p7), 1024   ;;  %s1262_s24 = sld [smem:[#allocation11_spill]] (!%p773_p7) }
  0x4a   : > { %v381_v8 = vadd.s32 128, %v380_v7  ;;  %v384_v10 = vadd.s32 %v383_v9, %v380_v7  ;;  %v436_v42 = vsub.s32 0, %v435_v41  ;;  %783 = vmatprep.subr.mxu0 (!%p773_p7), %v991_v3  ;;  %785 = vmatprep.mubr.msk.f32.mxu0 (!%p773_p7), %vm992_vm6, %v991_v3  ;;  %vm606_vm9 = vcmask (!%p773_p7), 1041408   ;;  %s1264_s14 = sld [smem:[#allocation13_spill]] (!%p773_p7) }
  0x4b   : > { %788 = vmatprep.subr.mxu1 (!%p773_p7), %v991_v3  ;;  %790 = vmatprep.mubr.msk.f32.mxu1 (!%p773_p7), %vm992_vm6, %v991_v3  ;;  %vm602_vm10 = vcmask (!%p773_p7), 15360  }
  0x4c   : > { %v385_v11 = vadd.s32 %v383_v9, %v381_v8  ;;  %vm386_vm2 = vcmp.lt.s32.totalorder %v384_v10, 400  ;;  %v483_v8 = vld [vmem:[%s1243_s3] sm:$0x3] (!%p773_p7) }
  0x4d   : > { %v392_v14 = vsel %vm386_vm2, %v377_v12, 0.0  ;;  %v484_v9 = vld [vmem:[%s1244_s4] sm:$0x3] (!%p773_p7) }
  0x4e   : > { %vm387_vm3 = vcmp.lt.s32.totalorder %v385_v11, 400 }
  0x4f   : > { %v393_v15 = vsel %vm387_vm3, %v378_v13, 0.0 }
  0x78   : > { %s794_s8 = spop %793 }
  0x79   : > { %v416_v29 = vstv %s794_s8  ;;  %s1263_s8 = sld [smem:[#allocation12_spill]] (!%p773_p7) }
  0x7f   : > { %v600_v41 = vld [vmem:[%s1263_s8] sm:$0xff] (!%p773_p7) }
  0xc7   : > { %v398_v16 = vpop.permute.xlu0 %397 }
  0xc8   : > { %v400_v17 = vmul.f32 %v398_v16, %v392_v14  ;;  %v401_v18 = vmul.f32 %v398_v16, %v393_v15 }
  0xca   : > { %v402_v19 = vrot.slane %v400_v17, 4  ;;  %v408_v20 = vrot.slane %v401_v18, 4 }
  0xcc   : > { %v403_v21 = vadd.f32 %v402_v19, %v400_v17  ;;  %v409_v22 = vadd.f32 %v408_v20, %v401_v18 }
  0xce   : > { %v404_v23 = vrot.slane %v403_v21, 2  ;;  %v410_v24 = vrot.slane %v409_v22, 2 }
  0xd0   : > { %v405_v25 = vadd.f32 %v404_v23, %v403_v21  ;;  %v411_v26 = vadd.f32 %v410_v24, %v409_v22 }
  0xd2   : > { %v406_v27 = vrot.slane %v405_v25, 1  ;;  %v412_v28 = vrot.slane %v411_v26, 1 }
  0xd4   : > { %v407_v30 = vadd.f32 %v406_v27, %v405_v25  ;;  %v413_v31 = vadd.f32 %v412_v28, %v411_v26 }
  0xd6   : > { %v417_v32 = vadd.f32 %v416_v29, %v407_v30  ;;  %v418_v33 = vadd.f32 %v416_v29, %v413_v31 }
  0xd8   : > { %v419_v34 = vsel %vm386_vm2, %v417_v32, -inf  ;;  %v420_v35 = vsel %vm387_vm3, %v418_v33, -inf }
  0xd9   : > { %v422_v36 = vmax.f32 %v419_v34, %v420_v35 }
  0xdb   : > { %423 = vmax.xlane.f32.xlu0 %v422_v36 }
 0x168   : > { %v424_v38 = vpop.xlane.xlu0 %423 }
 0x169   : > { %v425_v39 = vmax.f32 %v421_v37, %v424_v38 }
 0x16b   : > { %v426_v40 = vsub.f32 %v421_v37, %v425_v39  ;;  %468 = vst.msk [vmem:[#allocation2] sm:$0x1] %vm450_vm4, %v425_v39  ;;  %431 = vperm.xlu1 %878, %v425_v39   ;;  %v597_v37 = vld [vmem:[%s1262_s24] sm:$0x3] (!%p773_p7) }
 0x16d   : > { %v427_v55 = vmul.f32 1.442695, %v426_v40 }
 0x1ea   : > { %v432_v43 = vpop.permute.xlu1 %431 }
 0x1eb   : > { %v437_v44 = vrot.slane %v432_v43, %v436_v42 }
 0x1ed   : > { %v438_v45 = vsub.f32 %v419_v34, %v437_v44  ;;  %v439_v46 = vsub.f32 %v420_v35, %v437_v44  ;;  %v595_v35 = vld [vmem:[%s1245_s5] sm:$0x3] (!%p773_p7) }
 0x1ef   : > { %v440_v47 = vmul.f32 1.442695, %v438_v45  ;;  %v442_v48 = vmul.f32 1.442695, %v439_v46 }
 0x1f1   : > { %879 = vpow2.f32 %v440_v47 }
 0x1f2   : > { %881 = vpow2.f32 %v442_v48 }
 0x1f3   : > { %883 = vpow2.f32 %v427_v55 }
 0x1fb   : > { %v880_v49 = vpop.eup %879 }
 0x1fc   : > { %v882_v50 = vpop.eup %881  ;;  %v460_v51 = vmul.f32 %v880_v49, %v392_v14 }
 0x1fd   : > { %v446_v52 = vadd.f32 %v882_v50, %v880_v49  ;;  %v461_v53 = vmul.f32 %v882_v50, %v393_v15  ;;  %v884_v56 = vpop.eup %883 }
 0x1fe   : > { %v457_v58 = vrot.slane %v884_v56, %v436_v42  ;;  %v445_v60 = vmul.f32 %v884_v56, %v444_v57 }
 0x1ff   : > { %447 = vadd.xlane.f32.xlu1 %v446_v52  ;;  %v462_v54 = vadd.f32 %v461_v53, %v460_v51 }
 0x200   : > { %v459_v63 = vmul.f32 %v457_v58, %v452_v59 }
 0x201   : > { %463 = vadd.xlane.f32.xlu0 %v462_v54 }
 0x28b   : > { %472 = sbr.rel (%p773_p7) target bundleno = 1601 (0x641), region = 68 }
 0x28c   : > { %v448_v61 = vpop.xlane.xlu1 %447 }
 0x28d   : > { %v449_v62 = vadd.f32 %v448_v61, %v445_v60 }
 0x28e   : > { %v464_v0 = vpop.xlane.xlu0 %463 }
 0x28f   : > { %451 = vst.msk [vmem:[#allocation3] sm:$0x1] %vm450_vm4, %v449_v62  ;;  %v465_v1 = vadd.f32 %v464_v0, %v459_v63 }
 0x291   : > { %467 = vst.msk [vmem:[#allocation4] sm:$0xff] %vm466_vm5, %v465_v1 }
 0x296   : > { %v474_v2 = vld [vmem:[#allocation3] sm:$0x1] }
 0x297   : > { %885 = vrcp.f32 %v474_v2 }
 0x298   : > { %v473_v5 = vld [vmem:[#allocation4] sm:$0xff] }
 0x2a1   : > { %v886_v4 = vpop.eup %885 }
 0x2a2   : > { %v480_v6 = vrot.slane %v886_v4, %v436_v42  ;;  %v601_v42 = vld [vmem:[%s1264_s14] sm:$0xff] }
 0x2a4   : > { %v482_v7 = vmul.f32 %v480_v6, %v473_v5 }
 0x2a6   : > { %784 = vmatpush3.msra.mxu0 %v482_v7 }
 0x2a7   : > { %786 = vmatmul.mubr.msk.f32.vlgmr.msra.gmra.mrb[0].mxu0 %vm485_vm7, %v483_v8 }
 0x37a   : > { %v555_v10 = vpop.f32.mrb[0].mxu0 }
 0x37b   : > { %v556_v11 = vadd.f32 %v555_v10, %v484_v9  ;;  %v787_v12 = vpop.f32.mrb[1].mxu0 }
 0x37d   : > { %v560_v13 = vsel %vm559_vm8, %v556_v11, 0.0 }
 0x37e   : > { %561 = vadd.xlane.f32.xlu0 %v560_v13 }
 0x40b   : > { %v562_v14 = vpop.xlane.xlu0 %561 }
 0x40c   : > { %v563_v15 = vrot.slane %v562_v14, 4 }
 0x40e   : > { %v564_v16 = vadd.f32 %v563_v15, %v562_v14 }
 0x410   : > { %v565_v17 = vrot.slane %v564_v16, 2 }
 0x412   : > { %v566_v18 = vadd.f32 %v565_v17, %v564_v16 }
 0x414   : > { %v567_v19 = vrot.slane %v566_v18, 1 }
 0x416   : > { %v568_v20 = vadd.f32 %v567_v19, %v566_v18 }
 0x418   : > { %795 = vpush %v568_v20 }
 0x449   : > { %s796_s28 = spop %795 }
 0x44a   : > { %s572_s29 = smul.f32 0.5, %s796_s28 }
 0x44c   : > { %v573_v21 = vstv %s572_s29 }
 0x44d   : > { %v574_v22 = vsub.f32 %v556_v11, %v573_v21 }
 0x44f   : > { %v575_v23 = vmul.f32 %v574_v22, %v574_v22 }
 0x451   : > { %v576_v24 = vsel %vm559_vm8, %v575_v23, 0.0 }
 0x452   : > { %577 = vadd.xlane.f32.xlu0 %v576_v24 }
 0x4df   : > { %v578_v25 = vpop.xlane.xlu0 %577 }
 0x4e0   : > { %v579_v26 = vrot.slane %v578_v25, 4 }
 0x4e2   : > { %v580_v27 = vadd.f32 %v579_v26, %v578_v25 }
 0x4e4   : > { %v581_v28 = vrot.slane %v580_v27, 2 }
 0x4e6   : > { %v582_v29 = vadd.f32 %v581_v28, %v580_v27 }
 0x4e8   : > { %v583_v30 = vrot.slane %v582_v29, 1 }
 0x4ea   : > { %v584_v31 = vadd.f32 %v583_v30, %v582_v29 }
 0x4ec   : > { %797 = vpush %v584_v31 }
 0x51d   : > { %s798_s10 = spop %797 }
 0x51e   : > { %s588_s11 = smul.f32 0.5, %s798_s10 }
 0x520   : > { %s589_s2 = sadd.f32 1e-05, %s588_s11 }
 0x522   : > { %v590_v32 = vstv %s589_s2 }
 0x523   : > { %887 = vrsqrt.f32 %v590_v32 }
 0x52d   : > { %v888_v33 = vpop.eup %887 }
 0x52e   : > { %799 = vpush %v888_v33 }
 0x55f   : > { %s800_s25 = spop %799 }
 0x560   : > { %v593_v34 = vstv %s800_s25 }
 0x561   : > { %v594_v36 = vmul.f32 %v593_v34, %v574_v22 }
 0x563   : > { %v596_v38 = vmul.f32 %v595_v35, %v594_v36 }
 0x565   : > { %v598_v39 = vadd.f32 %v597_v37, %v596_v38 }
 0x567   : > { %v599_v40 = vmax.f32 %v598_v39, 0.0 }
 0x569   : > { %789 = vmatpush3.msk.msra.mxu1 %vm606_vm9, %v599_v40 }
 0x56a   : > { %791 = vmatmul.mubr.msk.f32.vlgmr.msra.gmra.mrb[0].mxu1 %vm602_vm10, %v600_v41 }
 0x63d   : > { %v676_v43 = vpop.f32.mrb[0].mxu1 }
 0x63e   : > { %v677_v44 = vadd.f32 %v676_v43, %v601_v42  ;;  %v792_v45 = vpop.f32.mrb[1].mxu1 }
 0x640   : > { %680 = vst.msk [vmem:[%s1175_s22] sm:$0xff] %vm466_vm5, %v677_v44 }
 0x641 PF: > { %s24_s18 = sadd.s32 1, %s985_s18   ;;  %s1265_s27 = sld [smem:[#allocation9_spill]] }
 0x642   : > { %p21_p12 = scmp.ge.s32.totalorder %s24_s18, 6   ;;  %s1266_s28 = sld [smem:[#allocation10_spill]] }
 0x643   : > { %s1267_s11 = smov %s961_s12  ;;  %s1268_s12 = smov %s965_s13 }
 0x644   : > { %s1269_s13 = smov %s1113_s30  ;;  %s1270_s14 = smov %s977_s16 }
 0x645   : > { %s1271_s15 = smov %s981_s17  ;;  %23 = sbr.rel (!%p21_p12) target bundleno = 9 (0x9), region = 104 }
 0x647   : > { %s1272_s16 = smov %s1265_s27 }
 0x648   : > { %s1273_s17 = smov %s1266_s28 }
 0x64c   :  { %700 = vsyncpa [#allocation7], 1 }
 0x64d   :  { %702 = vsyncpa [#allocation7 + $0x1], 1 }

</bundles_post_ra>
